<compile_context>
chip_gen: v6e
topology: v6e:2x2x1
jax: 0.10.0
libtpu: 0.0.40
codegen_flags: <defaults>
</compile_context>

<pallas_src>
import math
import jax
import jax.numpy as jnp
from jax.experimental import pallas as pl
from jax.experimental.pallas import tpu as pltpu


def _round_up(x, m):
    return ((x + m - 1) // m) * m


def _glu_kernel(x_ref, w_ref, b_ref, o_ref):
    # x_ref: (tm, K) bf16 ; w_ref: (K, 2*Hp) bf16 ; b_ref: (1, 2*Hp) f32
    # o_ref: (tm, Hp)
    z = jnp.dot(x_ref[...], w_ref[...], preferred_element_type=jnp.float32)
    z = z + b_ref[...]                       # bias broadcast over rows, f32
    hp = o_ref.shape[-1]                     # Hp is a multiple of 128
    a = z[:, :hp]                            # lane-aligned split (no XLU shuffle)
    g = z[:, hp:]
    o_ref[...] = (a * jax.nn.sigmoid(g)).astype(o_ref.dtype)


def gated_linear_unit(x, weight_t, bias, *, tm=512, compute_dtype=jnp.bfloat16):
    """GLU forward.  x: (..., K); weight_t: (K, 2H); bias: (2H,). Returns (..., H)."""
    orig_shape = x.shape
    K = orig_shape[-1]
    two_h = weight_t.shape[1]
    H = two_h // 2

    # ---- lane-dense H: pad each GLU half to a multiple of 128 columns -------
    Hp = _round_up(H, 128)
    w_a, w_g = weight_t[:, :H], weight_t[:, H:]
    b_a, b_g = bias[:H], bias[H:]
    if Hp != H:
        pad = Hp - H
        w_a = jnp.pad(w_a, ((0, 0), (0, pad)))
        w_g = jnp.pad(w_g, ((0, 0), (0, pad)))
        b_a = jnp.pad(b_a, (0, pad))
        b_g = jnp.pad(b_g, (0, pad))
    w_packed = jnp.concatenate([w_a, w_g], axis=1).astype(compute_dtype)   # (K, 2*Hp)
    b_packed = jnp.concatenate([b_a, b_g]).reshape(1, 2 * Hp).astype(jnp.float32)

    # ---- flatten leading dims, pick a large 128-multiple M tile --------------
    x2 = x.reshape(-1, K)
    M = x2.shape[0]
    tm = _round_up(max(tm, 128), 128)          # >=128, multiple of 128 (MXU height)
    tm = min(tm, _round_up(M, 128))            # don't over-pad tiny inputs
    grid_m = pl.cdiv(M, tm)
    M_pad = grid_m * tm
    if M_pad != M:
        x2 = jnp.pad(x2, ((0, M_pad - M), (0, 0)))
    x2 = x2.astype(compute_dtype)

    # ---- VMEM budget (double-buffered x/out, resident weight+bias, f32 z) ----
    in_b = jnp.dtype(compute_dtype).itemsize
    out_b = jnp.dtype(x.dtype).itemsize
    needed = (2 * tm * K * in_b            # x tiles (double-buffered)
              + 2 * K * 2 * Hp * in_b      # weight block
              + 2 * 2 * Hp * 4             # bias block
              + 2 * tm * Hp * out_b        # output tiles (double-buffered)
              + tm * 2 * Hp * 4)           # f32 z intermediate headroom
    vmem_limit = int(min(64 * 1024 * 1024, max(2 * needed, 16 * 1024 * 1024)))

    out = pl.pallas_call(
        _glu_kernel,
        out_shape=jax.ShapeDtypeStruct((M_pad, Hp), x.dtype),
        grid_spec=pltpu.PrefetchScalarGridSpec(
            num_scalar_prefetch=0,
            grid=(grid_m,),
            in_specs=[
                pl.BlockSpec((tm, K), lambda i: (i, 0)),          # x rows
                pl.BlockSpec((K, 2 * Hp), lambda i: (0, 0)),      # full weight
                pl.BlockSpec((1, 2 * Hp), lambda i: (0, 0)),      # bias
            ],
            out_specs=pl.BlockSpec((tm, Hp), lambda i: (i, 0)),
        ),
        compiler_params=pltpu.CompilerParams(
            dimension_semantics=("parallel",),
            vmem_limit_bytes=vmem_limit,
        ),
    )(x2, w_packed, b_packed)

    out = out[:M, :H]
    return out.reshape(*orig_shape[:-1], H)


def init_params(key, input_size, hidden_size):
    """Matches GatedLinearUnit.init_weights: xavier_uniform fc.weight, zero bias."""
    two_h = 2 * hidden_size
    # torch Linear weight has shape (out_features, in_features) = (2H, K);
    # xavier bound uses fan_in=K, fan_out=2H.
    bound = math.sqrt(6.0 / (input_size + two_h))
    w = jax.random.uniform(key, (two_h, input_size), jnp.float32,
                           minval=-bound, maxval=bound)
    weight_t = jnp.transpose(w)                 # (K, 2H) for the kernel
    bias = jnp.zeros((two_h,), jnp.float32)
    return weight_t, bias


if __name__ == "__main__":
    # TODO(synk): nn.Dropout(0.1) is identity in eval mode; train-mode dropout
    # (random masking + 1/(1-p) scaling) is omitted here.
    batch, seq, input_size, hidden = 2, 8, 32, 32

    key = jax.random.PRNGKey(0)
    kx, kw = jax.random.split(key)
    x = jax.random.normal(kx, (batch, seq, input_size), jnp.float32)
    weight_t, bias = init_params(kw, input_size, hidden)

    out = gated_linear_unit(x, weight_t, bias)
    out = jax.block_until_ready(out)

    # Reference in plain JAX, using the same bf16-cast operands as the kernel
    # (MXU accumulates in f32), so tolerances stay tight.
    xb = x.astype(jnp.bfloat16).astype(jnp.float32)
    wb = weight_t.astype(jnp.bfloat16).astype(jnp.float32)
    z = xb @ wb + bias
    ref = z[..., :hidden] * jax.nn.sigmoid(z[..., hidden:])

    assert out.shape == (batch, seq, hidden)
    assert jnp.allclose(out, ref, atol=1e-3, rtol=1e-3)

    print("KERNEL_OK")
</pallas_src>

<mosaic_0001>
module attributes {stable_mosaic.version = 11 : i64} {
  func.func @_glu_kernel(%arg0: i32, %arg1: memref<128x32xbf16, #tpu.memory_space<vmem>>, %arg2: memref<32x256xbf16, #tpu.memory_space<vmem>>, %arg3: memref<1x256xf32, #tpu.memory_space<vmem>>, %arg4: memref<128x128xf32, #tpu.memory_space<vmem>>) attributes {dimension_semantics = [#tpu.dimension_semantics<parallel>], iteration_bounds = array<i64: 1>, scalar_prefetch = 0 : i64, scratch_operands = 0 : i64, tpu.core_type = #tpu.core_type<tc>, window_params = [{transform_indices = @transform_0, window_bounds = array<i64: 128, 32>}, {pipeline_mode = #tpu.pipeline_mode<synchronous>, transform_indices = @transform_1, window_bounds = array<i64: 32, 256>}, {pipeline_mode = #tpu.pipeline_mode<synchronous>, transform_indices = @transform_2, window_bounds = array<i64: 1, 256>}, {transform_indices = @transform_3, window_bounds = array<i64: 128, 128>}]} {
    %c0 = arith.constant 0 : index
    %c0_0 = arith.constant 0 : index
    %0 = vector.load %arg1[%c0, %c0_0] : memref<128x32xbf16, #tpu.memory_space<vmem>>, vector<128x32xbf16>
    %c0_1 = arith.constant 0 : index
    %c0_2 = arith.constant 0 : index
    %1 = vector.load %arg2[%c0_1, %c0_2] : memref<32x256xbf16, #tpu.memory_space<vmem>>, vector<32x256xbf16>
    %cst = arith.constant dense<0.000000e+00> : vector<128x256xf32>
    %2 = tpu.matmul %0, %1, %cst {dimension_numbers = #tpu.dot_dimension_numbers<[1], [0], [0], [1], [0, 0, 1, 1], [], []>} : vector<128x32xbf16>, vector<32x256xbf16>, vector<128x256xf32> -> vector<128x256xf32>
    %c0_3 = arith.constant 0 : index
    %c0_4 = arith.constant 0 : index
    %3 = vector.load %arg3[%c0_3, %c0_4] : memref<1x256xf32, #tpu.memory_space<vmem>>, vector<1x256xf32>
    %4 = vector.broadcast %3 : vector<1x256xf32> to vector<128x256xf32>
    %5 = arith.addf %2, %4 : vector<128x256xf32>
    %6 = vector.extract_strided_slice %5 {offsets = [0, 0], sizes = [128, 128], strides = [1, 1]} : vector<128x256xf32> to vector<128x128xf32>
    %7 = vector.extract_strided_slice %5 {offsets = [0, 128], sizes = [128, 128], strides = [1, 1]} : vector<128x256xf32> to vector<128x128xf32>
    %8 = arith.negf %7 : vector<128x128xf32>
    %9 = math.exp %8 : vector<128x128xf32>
    %cst_5 = arith.constant 1.000000e+00 : f32
    %10 = vector.broadcast %cst_5 : f32 to vector<128x128xf32>
    %11 = arith.addf %10, %9 : vector<128x128xf32>
    %12 = arith.divf %10, %11 : vector<128x128xf32>
    %13 = arith.mulf %6, %12 : vector<128x128xf32>
    %c0_6 = arith.constant 0 : index
    %c0_7 = arith.constant 0 : index
    %14 = vector.load %arg4[%c0_6, %c0_7] : memref<128x128xf32, #tpu.memory_space<vmem>>, vector<128x128xf32>
    tpu.vector_store %arg4[%c0_6, %c0_7], %13 {strides = array<i32>} : memref<128x128xf32, #tpu.memory_space<vmem>>, vector<128x128xf32>,
    return
  }
  func.func @transform_0(%arg0: i32) -> (i32, i32) {
    %c0_i32 = arith.constant 0 : i32
    %c0_i32_0 = arith.constant 0 : i32
    return %arg0, %c0_i32 : i32, i32
  }
  func.func @transform_1(%arg0: i32) -> (i32, i32) {
    %c0_i32 = arith.constant 0 : i32
    %c0_i32_0 = arith.constant 0 : i32
    %c0_i32_1 = arith.constant 0 : i32
    return %c0_i32, %c0_i32_0 : i32, i32
  }
  func.func @transform_2(%arg0: i32) -> (i32, i32) {
    %c0_i32 = arith.constant 0 : i32
    %c0_i32_0 = arith.constant 0 : i32
    %c0_i32_1 = arith.constant 0 : i32
    return %c0_i32, %c0_i32_0 : i32, i32
  }
  func.func @transform_3(%arg0: i32) -> (i32, i32) {
    %c0_i32 = arith.constant 0 : i32
    %c0_i32_0 = arith.constant 0 : i32
    return %arg0, %c0_i32 : i32, i32
  }
}

</mosaic_0001>

<bundles_post_ra>
// kernel: tpu_custom_call.1
= control target key start
LH: loop header
LB: loop body
LE: loop exit
PB: predicated region body
PF: predicated region fallthrough
CT: control target
= control target key end

     0   :  { %v534_v2 = vmov 0   ;;  %vm108_vm0 = vcmask 261120   ;;  %s700_s0 = inlined_call_operand.vmem [shape: bf16[128,32], index: 0, kind: input, shape index: {}]   ;;  %s701_s1 = inlined_call_operand.vmem [shape: bf16[32,256], index: 1, kind: input, shape index: {}]   ;;  %s702_s2 = inlined_call_operand.vmem [shape: f32[1,256], index: 2, kind: input, shape index: {}]   ;;  %s703_s3 = inlined_call_operand.hbm [shape: f32[128,128], index: 3, kind: output, shape index: {}]  }
   0x1   :  { %v434_v0 = vld [vmem:[%s701_s1 + $0x14] ss:$8 sps:$4 sm:$0xff]   ;;  %v436_v1 = vld [vmem:[%s701_s1 + $0x10] ss:$8 sps:$4 sm:$0xff]   ;;  %165 = vmatprep.mubr.bf16.mxu0 %v534_v2  ;;  %205 = vmatprep.mubr.bf16.mxu1 %v534_v2  ;;  %v437_v3 = vld [vmem:[%s701_s1 + $0x4] ss:$8 sps:$4 sm:$0xff]  }
   0x2   :  { %145 = vmatprep.subr.bf16.mxu0 %v434_v0  ;;  %426 = vmatprep.subr.bf16.mxu1 %v434_v0  ;;  %v439_v4 = vld [vmem:[%s701_s1] ss:$8 sps:$4 sm:$0xff]  }
   0x3   :  { %146 = vmatpush1.bf16.msra.mxu0 %v436_v1  ;;  %428 = vmatpush1.bf16.msra.mxu1 %v436_v1  ;;  %v440_v5 = vld [vmem:[%s700_s0] sm:$0xff]  }
   0x4   :  { %147 = vmatprep.subr.bf16.mxu0 %v437_v3  ;;  %427 = vmatprep.subr.bf16.mxu1 %v437_v3  ;;  %v441_v6 = vld [vmem:[%s700_s0 + $0x20] sm:$0xff]  }
   0x7   :  { %148 = vmatpush1.bf16.msra.mxu0 %v439_v4  ;;  %429 = vmatpush1.bf16.msra.mxu1 %v439_v4 }
   0xa   :  { %402 = vmatmul.mubr.msk.bf16.vlgmr.msra.gmra.mxu0 %vm108_vm0, %v440_v5  ;;  %406 = vmatmul.mubr.msk.bf16.vlgmr.msra.gmra.mxu1 %vm108_vm0, %v441_v6 }
   0xb   :  { %175 = vmatprep.mubr.bf16.mxu0 %v534_v2  ;;  %215 = vmatprep.mubr.bf16.mxu1 %v534_v2 }
   0xc   :  { %8 = vsyncpa [#allocation3], 0  ;;  %v442_v7 = vld [vmem:[%s700_s0 + $0x8] sm:$0xff]   ;;  %v444_v9 = vld [vmem:[%s700_s0 + $0x10] sm:$0xff]   ;;  %v38_v13 = vlaneseq }
   0xd   :  { %v443_v8 = vld [vmem:[%s700_s0 + $0x28] sm:$0xff]   ;;  %v445_v10 = vld [vmem:[%s700_s0 + $0x30] sm:$0xff]   ;;  %v446_v11 = vld [vmem:[%s700_s0 + $0x18] sm:$0xff]  }
   0xe   :  { %v447_v12 = vld [vmem:[%s700_s0 + $0x38] sm:$0xff]   ;;  %v602_v14 = vshrl.u32 %v38_v13, 7  ;;  %v608_v16 = vld [vmem:[%s702_s2] sm:$0x3]  ;;  %s535_s0 = smov [#allocation2]  }
   0xf   :  { %s379_s2 = sshll.u32 %s535_s0, 4  ;;  %s380_s2 = int_to_ptr.vmem [resolvable:$true] %s379_s2 }
  0x10   :  { %v44_v15 = vsub.s32 1, %v602_v14  ;;  %s512_s10 = scalar_lea.vmem %s380_s2, 2048  ;;  %p517_p1 = scmp.lt.s32.totalorder %s380_s2, %s380_s2 }
  0x11   :  { %p513_p0 = scmp.ne.s32.totalorder %s380_s2, %s512_s10  ;;  %p518_p2 = scmp.lt.s32.totalorder %s512_s10, %s512_s10 }
  0x12   :  { %403 = vmatmul.mubr.msk.bf16.gmra.mxu0 %vm108_vm0, %v442_v7  ;;  %407 = vmatmul.mubr.msk.bf16.gmra.mxu1 %vm108_vm0, %v443_v8  ;;  %v611_v17 = vrot.slane %v608_v16, %v44_v15  ;;  %v40_v15 = vsub.s32 0, %v602_v14 }
  0x13   :  { %185 = vmatprep.mubr.bf16.mxu0 %v534_v2  ;;  %225 = vmatprep.mubr.bf16.mxu1 %v534_v2  ;;  %p519_p3 = por %p518_p2, %p517_p1 }
  0x15   :  { %p520_p4 = pnand %p519_p3, %p513_p0 }
  0x1a   :  { %404 = vmatmul.mubr.msk.bf16.gmra.mxu0 %vm108_vm0, %v444_v9  ;;  %408 = vmatmul.mubr.msk.bf16.gmra.mxu1 %vm108_vm0, %v445_v10 }
  0x1b   :  { %195 = vmatprep.mubr.bf16.mxu0 %v534_v2  ;;  %235 = vmatprep.mubr.bf16.mxu1 %v534_v2 }
  0x22   :  { %405 = vmatmul.mubr.msk.bf16.gmra.mxu0 %vm108_vm0, %v446_v11  ;;  %409 = vmatmul.mubr.msk.bf16.gmra.mxu1 %vm108_vm0, %v447_v12 }
  0xca   :  { %v613_v18 = vpop.f32.mrf.mxu0  ;;  %v615_v19 = vpop.f32.mrf.mxu1 }
  0xcc   :  { %v169_v20 = vpop.f32.mrf.mxu0  ;;  %v209_v21 = vpop.f32.mrf.mxu1 }
  0xcd   :  { %v170_v22 = vadd.f32 %v169_v20, %v611_v17  ;;  %v210_v23 = vadd.f32 %v209_v21, %v611_v17 }
  0xce   :  { %v619_v24 = vpop.f32.mrf.mxu0  ;;  %v621_v25 = vpop.f32.mrf.mxu1 }
  0xcf   :  { %v410_v26 = vmul.f32 -1.442695, %v170_v22  ;;  %v418_v27 = vmul.f32 -1.442695, %v210_v23 }
  0xd0   :  { %v173_v28 = vpop.f32.mrf.mxu0  ;;  %v213_v29 = vpop.f32.mrf.mxu1 }
  0xd1   :  { %448 = vpow2.f32 %v410_v26  ;;  %v174_v30 = vadd.f32 %v173_v28, %v611_v17  ;;  %v214_v31 = vadd.f32 %v213_v29, %v611_v17 }
  0xd2   :  { %450 = vpow2.f32 %v418_v27  ;;  %v625_v32 = vpop.f32.mrf.mxu0  ;;  %v627_v33 = vpop.f32.mrf.mxu1 }
  0xd3   :  { %v411_v34 = vmul.f32 -1.442695, %v174_v30  ;;  %v419_v35 = vmul.f32 -1.442695, %v214_v31 }
  0xd4   :  { %v179_v36 = vpop.f32.mrf.mxu0  ;;  %v219_v37 = vpop.f32.mrf.mxu1 }
  0xd5   :  { %452 = vpow2.f32 %v411_v34  ;;  %v180_v38 = vadd.f32 %v179_v36, %v611_v17  ;;  %v220_v39 = vadd.f32 %v219_v37, %v611_v17 }
  0xd6   :  { %454 = vpow2.f32 %v419_v35  ;;  %v631_v40 = vpop.f32.mrf.mxu0  ;;  %v633_v41 = vpop.f32.mrf.mxu1  ;;  %v661_v35 = vrot.slane %v608_v16, %v40_v15 }
  0xd7   :  { %v412_v42 = vmul.f32 -1.442695, %v180_v38  ;;  %v420_v43 = vmul.f32 -1.442695, %v220_v39 }
  0xd8   :  { %v183_v44 = vpop.f32.mrf.mxu0  ;;  %v223_v45 = vpop.f32.mrf.mxu1 }
  0xd9   :  { %456 = vpow2.f32 %v412_v42  ;;  %v184_v46 = vadd.f32 %v183_v44, %v611_v17  ;;  %v224_v47 = vadd.f32 %v223_v45, %v611_v17 }
  0xda   :  { %458 = vpow2.f32 %v420_v43  ;;  %v637_v48 = vpop.f32.mrf.mxu0  ;;  %v639_v49 = vpop.f32.mrf.mxu1 }
  0xdb   :  { %v413_v50 = vmul.f32 -1.442695, %v184_v46  ;;  %v421_v51 = vmul.f32 -1.442695, %v224_v47  ;;  %v168_v46 = vadd.f32 %v613_v18, %v661_v35  ;;  %v208_v47 = vadd.f32 %v615_v19, %v661_v35 }
  0xdc   :  { %v189_v52 = vpop.f32.mrf.mxu0  ;;  %v229_v53 = vpop.f32.mrf.mxu1  ;;  %v212_v18 = vadd.f32 %v621_v25, %v661_v35 }
  0xdd   :  { %460 = vpow2.f32 %v413_v50  ;;  %v190_v54 = vadd.f32 %v189_v52, %v611_v17  ;;  %v230_v55 = vadd.f32 %v229_v53, %v611_v17 }
  0xde   :  { %v449_v56 = vpop.eup %448  ;;  %462 = vpow2.f32 %v421_v51  ;;  %v643_v57 = vpop.f32.mrf.mxu0 }
  0xdf   :  { %v645_v58 = vpop.f32.mrf.mxu1  ;;  %v451_v59 = vpop.eup %450  ;;  %v294_v60 = vadd.f32 1.0, %v449_v56  ;;  %v414_v61 = vmul.f32 -1.442695, %v190_v54  ;;  %v422_v63 = vmul.f32 -1.442695, %v230_v55  ;;  %v172_v54 = vadd.f32 %v619_v24, %v661_v35 }
  0xe0   :  { %v302_v62 = vadd.f32 1.0, %v451_v59  ;;  %v193_v0 = vpop.f32.mrf.mxu0 }
  0xe1   :  { %v233_v1 = vpop.f32.mrf.mxu1  ;;  %464 = vrcp.f32 %v294_v60  ;;  %v194_v2 = vadd.f32 %v193_v0, %v611_v17  ;;  %v178_v0 = vadd.f32 %v625_v32, %v661_v35 }
  0xe2   :  { %v234_v3 = vadd.f32 %v233_v1, %v611_v17  ;;  %v453_v4 = vpop.eup %452  ;;  %466 = vrcp.f32 %v302_v62  ;;  %v649_v5 = vpop.f32.mrf.mxu0 }
  0xe3   :  { %v651_v6 = vpop.f32.mrf.mxu1  ;;  %v455_v7 = vpop.eup %454  ;;  %v295_v8 = vadd.f32 1.0, %v453_v4  ;;  %468 = vpow2.f32 %v414_v61  ;;  %v415_v9 = vmul.f32 -1.442695, %v194_v2  ;;  %v218_v2 = vadd.f32 %v627_v33, %v661_v35 }
  0xe4   :  { %v303_v10 = vadd.f32 1.0, %v455_v7  ;;  %470 = vpow2.f32 %v422_v63  ;;  %v423_v11 = vmul.f32 -1.442695, %v234_v3  ;;  %v199_v12 = vpop.f32.mrf.mxu0 }
  0xe5   :  { %v239_v13 = vpop.f32.mrf.mxu1  ;;  %472 = vrcp.f32 %v295_v8  ;;  %v200_v20 = vadd.f32 %v199_v12, %v611_v17  ;;  %v222_v12 = vadd.f32 %v633_v41, %v661_v35  ;;  %v228_v41 = vadd.f32 %v639_v49, %v661_v35 }
  0xe6   :  { %v240_v21 = vadd.f32 %v239_v13, %v611_v17  ;;  %v457_v22 = vpop.eup %456  ;;  %474 = vrcp.f32 %v303_v10  ;;  %v656_v23 = vpop.f32.mrf.mxu0  ;;  %v182_v10 = vadd.f32 %v631_v40, %v661_v35  ;;  %v188_v40 = vadd.f32 %v637_v48, %v661_v35 }
  0xe7   :  { %v658_v26 = vpop.f32.mrf.mxu1  ;;  %v459_v27 = vpop.eup %458  ;;  %v296_v28 = vadd.f32 1.0, %v457_v22  ;;  %476 = vpow2.f32 %v415_v9  ;;  %v416_v29 = vmul.f32 -1.442695, %v200_v20  ;;  %v198_v49 = vadd.f32 %v649_v5, %v661_v35 }
  0xe8   :  { %v304_v30 = vadd.f32 1.0, %v459_v27  ;;  %478 = vpow2.f32 %v423_v11  ;;  %v424_v31 = vmul.f32 -1.442695, %v240_v21  ;;  %v203_v34 = vpop.f32.mrf.mxu0 }
  0xe9   :  { %v243_v14 = vpop.f32.mrf.mxu1  ;;  %480 = vrcp.f32 %v296_v28  ;;  %v204_v36 = vadd.f32 %v203_v34, %v611_v17 }
  0xea   :  { %v244_v37 = vadd.f32 %v243_v14, %v611_v17  ;;  %v461_v38 = vpop.eup %460  ;;  %482 = vrcp.f32 %v304_v30  ;;  %v192_v14 = vadd.f32 %v643_v57, %v661_v35 }
  0xeb   :  { %v463_v39 = vpop.eup %462  ;;  %v297_v42 = vadd.f32 1.0, %v461_v38  ;;  %484 = vpow2.f32 %v416_v29  ;;  %v417_v43 = vmul.f32 -1.442695, %v204_v36 }
  0xec   :  { %v305_v44 = vadd.f32 1.0, %v463_v39  ;;  %486 = vpow2.f32 %v424_v31  ;;  %v425_v45 = vmul.f32 -1.442695, %v244_v37  ;;  %v232_v37 = vadd.f32 %v645_v58, %v661_v35 }
  0xed   :  { %488 = vrcp.f32 %v297_v42  ;;  %v202_v58 = vadd.f32 %v656_v23, %v661_v35 }
  0xee   :  { %v465_v16 = vpop.eup %464  ;;  %490 = vrcp.f32 %v305_v44 }
  0xef   :  { %v467_v50 = vpop.eup %466  ;;  %v342_v17 = vmul.f32 %v465_v16, %v168_v46  ;;  %492 = vpow2.f32 %v417_v43  ;;  %v238_v43 = vadd.f32 %v651_v6, %v661_v35  ;;  %v242_v16 = vadd.f32 %v658_v26, %v661_v35 }
  0xf0   :  { %v469_v51 = vpop.eup %468  ;;  %v350_v52 = vmul.f32 %v467_v50, %v208_v47  ;;  %494 = vpow2.f32 %v425_v45 }
  0xf1   :  { %v471_v53 = vpop.eup %470  ;;  %358 = vst [vmem:[#allocation2] sm:$0xff] %v342_v17  ;;  %v298_v55 = vadd.f32 1.0, %v469_v51 }
  0xf2   :  { %v473_v56 = vpop.eup %472  ;;  %366 = vst [vmem:[#allocation2 + $0x40] sm:$0xff] %v350_v52  ;;  %v306_v59 = vadd.f32 1.0, %v471_v53 }
  0xf3   :  { %v475_v19 = vpop.eup %474  ;;  %v343_v60 = vmul.f32 %v473_v56, %v172_v54  ;;  %496 = vrcp.f32 %v298_v55 }
  0xf4   :  { %v477_v61 = vpop.eup %476  ;;  %v351_v62 = vmul.f32 %v475_v19, %v212_v18  ;;  %498 = vrcp.f32 %v306_v59 }
  0xf5   :  { %v479_v63 = vpop.eup %478  ;;  %359 = vst [vmem:[#allocation2 + $0x8] sm:$0xff] %v343_v60  ;;  %v299_v1 = vadd.f32 1.0, %v477_v61 }
  0xf6   :  { %v481_v24 = vpop.eup %480  ;;  %367 = vst [vmem:[#allocation2 + $0x48] sm:$0xff] %v351_v62  ;;  %v307_v3 = vadd.f32 1.0, %v479_v63 }
  0xf7   :  { %v483_v25 = vpop.eup %482  ;;  %v344_v4 = vmul.f32 %v481_v24, %v178_v0  ;;  %500 = vrcp.f32 %v299_v1 }
  0xf8   :  { %v485_v7 = vpop.eup %484  ;;  %v352_v8 = vmul.f32 %v483_v25, %v218_v2  ;;  %502 = vrcp.f32 %v307_v3 }
  0xf9   :  { %v487_v9 = vpop.eup %486  ;;  %360 = vst [vmem:[#allocation2 + $0x10] sm:$0xff] %v344_v4  ;;  %v300_v11 = vadd.f32 1.0, %v485_v7 }
  0xfa   :  { %v489_v32 = vpop.eup %488  ;;  %368 = vst [vmem:[#allocation2 + $0x50] sm:$0xff] %v352_v8  ;;  %v308_v13 = vadd.f32 1.0, %v487_v9 }
  0xfb   :  { %v491_v33 = vpop.eup %490  ;;  %v345_v15 = vmul.f32 %v489_v32, %v182_v10  ;;  %504 = vrcp.f32 %v300_v11 }
  0xfc   :  { %v493_v20 = vpop.eup %492  ;;  %v353_v21 = vmul.f32 %v491_v33, %v222_v12  ;;  %506 = vrcp.f32 %v308_v13 }
  0xfd   :  { %v495_v22 = vpop.eup %494  ;;  %361 = vst [vmem:[#allocation2 + $0x18] sm:$0xff] %v345_v15  ;;  %v301_v27 = vadd.f32 1.0, %v493_v20 }
  0xfe   :  { %369 = vst [vmem:[#allocation2 + $0x58] sm:$0xff] %v353_v21  ;;  %v309_v28 = vadd.f32 1.0, %v495_v22 }
  0xff   :  { %508 = vrcp.f32 %v301_v27 }
 0x100   :  { %v497_v29 = vpop.eup %496  ;;  %510 = vrcp.f32 %v309_v28 }
 0x101   :  { %v499_v30 = vpop.eup %498  ;;  %v346_v31 = vmul.f32 %v497_v29, %v188_v40 }
 0x102   :  { %v354_v34 = vmul.f32 %v499_v30, %v228_v41 }
 0x103   :  { %362 = vst [vmem:[#allocation2 + $0x20] sm:$0xff] %v346_v31 }
 0x104   :  { %v501_v36 = vpop.eup %500  ;;  %370 = vst [vmem:[#allocation2 + $0x60] sm:$0xff] %v354_v34 }
 0x105   :  { %v503_v38 = vpop.eup %502  ;;  %v347_v48 = vmul.f32 %v501_v36, %v192_v14 }
 0x106   :  { %v355_v39 = vmul.f32 %v503_v38, %v232_v37 }
 0x107   :  { %363 = vst [vmem:[#allocation2 + $0x28] sm:$0xff] %v347_v48 }
 0x108   :  { %v505_v42 = vpop.eup %504  ;;  %371 = vst [vmem:[#allocation2 + $0x68] sm:$0xff] %v355_v39 }
 0x109   :  { %v507_v44 = vpop.eup %506  ;;  %v348_v45 = vmul.f32 %v505_v42, %v198_v49 }
 0x10a   :  { %v356_v57 = vmul.f32 %v507_v44, %v238_v43 }
 0x10b   :  { %364 = vst [vmem:[#allocation2 + $0x30] sm:$0xff] %v348_v45 }
 0x10c   :  { %v509_v46 = vpop.eup %508  ;;  %372 = vst [vmem:[#allocation2 + $0x70] sm:$0xff] %v356_v57 }
 0x10d   :  { %v511_v5 = vpop.eup %510  ;;  %v349_v47 = vmul.f32 %v509_v46, %v202_v58 }
 0x10e   :  { %v357_v50 = vmul.f32 %v511_v5, %v242_v16 }
 0x10f   :  { %365 = vst [vmem:[#allocation2 + $0x38] sm:$0xff] %v349_v47 }
 0x110   :  { %373 = vst [vmem:[#allocation2 + $0x78] sm:$0xff] %v357_v50 }
 0x111   :  { %523 = shalt.err (!%p520_p4)
}
 0x112   :  { %s536_s11 = smov 128   ;;  %s537_s12 = smov 8  }
 0x113   :  { %385 = dma.vmem_to_hbm [thread:$0]  %s380_s2, 2048, %s703_s3, [#allocation3], %s536_s11, %s536_s11, %s537_s12  }
 0x114   :  { %532 = dma.done.wait [#allocation3], 2048  }
 0x115   :  { %533 = vsyncadd [#allocation3], 4294965248 }
 0x116   :  { %389 = vsyncpa [#allocation3], 1 }

</bundles_post_ra>
